<compile_context>
chip_gen: v7x
topology: tpu7x:2x2x1
jax: 0.10.0
libtpu: 0.0.40
codegen_flags: <defaults>
</compile_context>

<pallas_src>
import jax
import jax.numpy as jnp
import numpy as np
from jax.experimental import pallas as pl
from jax.experimental.pallas import tpu as pltpu


def vit_bd_fusion_kernel(lhs0_ref, v2bf_ref, rt_ref, v1t_ref, v2t_ref,
                         w_ref, b_ref, wc_ref, bc_ref,
                         out_ref, qp_ref, cat_ref):
    """Grid = (stage, column_tile).  stage 0 = att_ques, stage 1 = att_bd.

    lhs0_ref : [N, 2H] bf16  resident  bf16(cat(out_roberta, out_vit1))
    v2bf_ref : [N, H]  bf16  resident  bf16(out_vit2)
    rt/v1t/v2t_ref : [N, TN] f32 column tiles of the features (for elementwise math)
    w_ref    : [2H, TN] bf16 column tile of the stacked (Wq, Wb) weights
    b_ref    : [1, TN]  f32  column tile of the stacked (bq, bb) biases
    wc_ref   : [1, TN]  f32  column tile of the classifier weight row
    bc_ref   : [1, 1]   f32  classifier bias
    out_ref  : [N, 1]   f32  logits accumulator (resident across the grid)
    qp_ref   : [n_tiles, N, TN] f32 VMEM scratch holding ques_part column tiles
    cat_ref  : [N, 2H] bf16 VMEM scratch holding the current stage's matmul lhs
    """
    s = pl.program_id(0)           # 0: att_ques stage, 1: att_bd stage
    j = pl.program_id(1)           # weight column tile index
    N = rt_ref.shape[0]
    TN = w_ref.shape[-1]
    H = cat_ref.shape[-1] // 2
    n_tiles = qp_ref.shape[0]      # static

    # --- (re)build the bf16 concat lhs once per stage, at the first column tile ---
    @pl.when(jnp.logical_and(s == 0, j == 0))
    def _():
        cat_ref[...] = lhs0_ref[...]                       # cat(out_roberta, out_vit1)

    @pl.when(jnp.logical_and(s == 1, j == 0))
    def _():
        cat_ref[:, :H] = v2bf_ref[...]                     # cat(out_vit2, ques_part)
        for t in range(n_tiles):                           # static unrolled
            cat_ref[:, H + t * TN:H + (t + 1) * TN] = qp_ref[t].astype(jnp.bfloat16)
        out_ref[...] = jnp.broadcast_to(bc_ref[...], out_ref.shape)   # init logits

    # --- single fused MXU pass per column tile: tanh(cat @ W_tile + b_tile) ---
    act = jnp.tanh(
        jnp.dot(cat_ref[...], w_ref[...], preferred_element_type=jnp.float32)
        + b_ref[...])                                      # [N, TN] f32

    @pl.when(s == 0)
    def _():
        # ques_part columns for this tile: r * sum_rows(tanh(.) * v1)
        qp = jnp.sum(act * v1t_ref[...], axis=0, keepdims=True)       # [1, TN]
        qp_ref[j] = rt_ref[...] * qp                                   # [N, TN]

    @pl.when(s == 1)
    def _():
        bd = jnp.sum(act * v2t_ref[...], axis=0, keepdims=True)        # [1, TN]
        # VIT_bd_v4: final = bd_part * ques_part * out_roberta
        final_t = bd * qp_ref[j] * rt_ref[...]                         # [N, TN]
        # classifier as a VPU/XLU reduction (no 1-wide MXU pass)
        out_ref[...] += jnp.sum(final_t * wc_ref[...], axis=1, keepdims=True)


def prepare_params(params):
    """One-time parameter repack: stack + bf16-quantize the streamed weights."""
    wq, bq, wb, bb, wc, bc = params
    H = wq.shape[1]
    w = jnp.stack([wq, wb]).astype(jnp.bfloat16)                 # [2, 2H, H]
    b = jnp.stack([bq, bb]).reshape(2, 1, H).astype(jnp.float32)  # [2, 1, H]
    wc_row = wc.reshape(1, H).astype(jnp.float32)                 # [1, H]
    bc_s = bc.reshape(1, 1).astype(jnp.float32)                   # [1, 1]
    return w, b, wc_row, bc_s


def vit_bd_v4_head(out_roberta, out_vit1, out_vit2, prepped, num_choices, tile_n=512):
    N, H = out_roberta.shape
    assert H % 128 == 0, "hidden size must be lane-aligned"
    w, b, wc_row, bc_s = prepped

    # Lane-dense weight column tile that divides H (512-wide for the real H=1024).
    tn = max(128, (min(tile_n, H) // 128) * 128)
    while H % tn:
        tn -= 128
    n_tiles = H // tn

    # Tiny per-call feature prep (<=100 KB): bf16 matmul lhs for stage 0 and the
    # bf16 first half of the stage-1 lhs.
    lhs0 = jnp.concatenate([out_roberta, out_vit1], axis=1).astype(jnp.bfloat16)
    v2bf = out_vit2.astype(jnp.bfloat16)

    cost = pl.CostEstimate(
        flops=int(2 * (2 * N * (2 * H) * H)),            # two 2H->H matmuls
        transcendentals=int(2 * N * H),                  # two tanh layers
        bytes_accessed=int(2 * (2 * H) * H * 2           # bf16 weights (dominant)
                           + 3 * N * H * 4 + N * 2 * H * 2 + N * H * 2
                           + 2 * H * 4 + H * 4 + N * 4),
    )

    grid_spec = pltpu.PrefetchScalarGridSpec(
        num_scalar_prefetch=0,
        grid=(2, n_tiles),                               # (stage, weight column tile)
        in_specs=[
            pl.BlockSpec((N, 2 * H), lambda s, j: (0, 0)),           # lhs0 (resident)
            pl.BlockSpec((N, H), lambda s, j: (0, 0)),               # v2 bf16 (resident)
            pl.BlockSpec((N, tn), lambda s, j: (0, j)),              # r column tile
            pl.BlockSpec((N, tn), lambda s, j: (0, j)),              # v1 column tile
            pl.BlockSpec((N, tn), lambda s, j: (0, j)),              # v2 column tile
            pl.BlockSpec((None, 2 * H, tn), lambda s, j: (s, 0, j)), # Wq/Wb tile (bf16)
            pl.BlockSpec((None, 1, tn), lambda s, j: (s, 0, j)),     # bq/bb tile
            pl.BlockSpec((1, tn), lambda s, j: (0, j)),              # classifier row tile
            pl.BlockSpec((1, 1), lambda s, j: (0, 0)),               # classifier bias
        ],
        out_specs=pl.BlockSpec((N, 1), lambda s, j: (0, 0)),         # logits accumulator
        scratch_shapes=[
            pltpu.VMEM((n_tiles, N, tn), jnp.float32),   # ques_part column tiles
            pltpu.VMEM((N, 2 * H), jnp.bfloat16),        # current-stage matmul lhs
        ],
    )

    logits = pl.pallas_call(
        vit_bd_fusion_kernel,
        out_shape=jax.ShapeDtypeStruct((N, 1), jnp.float32),
        grid_spec=grid_spec,
        compiler_params=pltpu.CompilerParams(
            dimension_semantics=("arbitrary", "arbitrary"),
            vmem_limit_bytes=32 * 1024 * 1024,
        ),
        cost_estimate=cost,
    )(lhs0, v2bf, out_roberta, out_vit1, out_vit2, w, b, wc_row, bc_s)

    # reshaped_logits = logits.view(-1, num_choices)
    return logits.reshape(-1, num_choices)


def reference_head(r, v1, v2, params, num_choices):
    """Pure-JAX reference for VIT_bd_v4's fusion head, applying the same bf16
    weight/lhs quantization as the kernel's MXU matmuls (f32 accumulation)."""
    wq, bq, wb, bb, wc, bc = params
    bf = lambda x: x.astype(jnp.bfloat16)
    aq = jnp.tanh(jnp.dot(bf(jnp.concatenate([r, v1], axis=1)), bf(wq),
                          preferred_element_type=jnp.float32) + bq)
    ques_part = r * jnp.sum(aq * v1, axis=0)
    ab = jnp.tanh(jnp.dot(bf(jnp.concatenate([v2, ques_part], axis=1)), bf(wb),
                          preferred_element_type=jnp.float32) + bb)
    bd_part = jnp.sum(ab * v2, axis=0)
    final = bd_part * ques_part * r                      # v4: bd * ques_part * roberta
    logits = final @ wc + bc
    return logits.reshape(-1, num_choices)


if __name__ == "__main__":
    batch, num_choices, H = 2, 4, 256                    # real model: H = 1024
    N = batch * num_choices

    key = jax.random.PRNGKey(0)
    ks = jax.random.split(key, 9)

    # Synthetic deterministic stand-ins for the backbone pooled outputs.
    out_roberta = jax.random.normal(ks[0], (N, H), jnp.float32)
    out_vit1 = jax.random.normal(ks[1], (N, H), jnp.float32)
    out_vit2 = jax.random.normal(ks[2], (N, H), jnp.float32)

    # Deterministic parameter init (shapes follow the module __init__, with
    # 2048->1024 and 1024->1 scaled down to 2H->H and H->1).
    scale = 0.05
    wq = scale * jax.random.normal(ks[3], (2 * H, H), jnp.float32)   # att_ques Linear
    bq = scale * jax.random.normal(ks[4], (H,), jnp.float32)
    wb = scale * jax.random.normal(ks[5], (2 * H, H), jnp.float32)   # att_bd Linear
    bb = scale * jax.random.normal(ks[6], (H,), jnp.float32)
    wc = scale * jax.random.normal(ks[7], (H, 1), jnp.float32)       # classifier
    bc = scale * jax.random.normal(ks[8], (1,), jnp.float32)
    params = (wq, bq, wb, bb, wc, bc)

    prepped = prepare_params(params)
    head = jax.jit(vit_bd_v4_head, static_argnums=(4, 5))

    # tile_n=128 -> 2 weight-column tiles per stage at H=256 (exercises streaming,
    # the ques_part scratch reassembly, and the logits accumulation path).
    out = head(out_roberta, out_vit1, out_vit2, prepped, num_choices, 128)
    out = jax.block_until_ready(out)

    ref = reference_head(out_roberta, out_vit1, out_vit2, params, num_choices)
    # Tolerance covers transcendental-approximation / accumulation-order deltas on
    # top of the deliberate bf16 weight quantization (matched in the reference).
    np.testing.assert_allclose(np.asarray(out), np.asarray(ref), rtol=1e-2, atol=1e-2)
    assert out.shape == (batch, num_choices)

    print("KERNEL_OK")
</pallas_src>

<mosaic_0001>
module attributes {stable_mosaic.version = 11 : i64} {
  func.func @vit_bd_fusion_kernel(%arg0: i32, %arg1: i32, %arg2: memref<8x512xbf16, #tpu.memory_space<vmem>>, %arg3: memref<8x256xbf16, #tpu.memory_space<vmem>>, %arg4: memref<8x128xf32, #tpu.memory_space<vmem>>, %arg5: memref<8x128xf32, #tpu.memory_space<vmem>>, %arg6: memref<8x128xf32, #tpu.memory_space<vmem>>, %arg7: memref<1x512x128xbf16, #tpu.memory_space<vmem>>, %arg8: memref<1x1x128xf32, #tpu.memory_space<vmem>>, %arg9: memref<1x128xf32, #tpu.memory_space<vmem>>, %arg10: memref<1x1xf32, #tpu.memory_space<vmem>>, %arg11: memref<8x1xf32, #tpu.memory_space<vmem>>, %arg12: memref<2x8x128xf32, #tpu.memory_space<vmem>>, %arg13: memref<8x512xbf16, #tpu.memory_space<vmem>>) attributes {dimension_semantics = [#tpu.dimension_semantics<arbitrary>, #tpu.dimension_semantics<arbitrary>], iteration_bounds = array<i64: 2, 2>, scalar_prefetch = 0 : i64, scratch_operands = 2 : i64, tpu.core_type = #tpu.core_type<tc>, window_params = [{pipeline_mode = #tpu.pipeline_mode<synchronous>, transform_indices = @transform_0, window_bounds = array<i64: 8, 512>}, {pipeline_mode = #tpu.pipeline_mode<synchronous>, transform_indices = @transform_1, window_bounds = array<i64: 8, 256>}, {transform_indices = @transform_2, window_bounds = array<i64: 8, 128>}, {transform_indices = @transform_3, window_bounds = array<i64: 8, 128>}, {transform_indices = @transform_4, window_bounds = array<i64: 8, 128>}, {transform_indices = @transform_5, window_bounds = array<i64: 1, 512, 128>}, {transform_indices = @transform_6, window_bounds = array<i64: 1, 1, 128>}, {transform_indices = @transform_7, window_bounds = array<i64: 1, 128>}, {pipeline_mode = #tpu.pipeline_mode<synchronous>, transform_indices = @transform_8, window_bounds = array<i64: 1, 1>}, {pipeline_mode = #tpu.pipeline_mode<synchronous>, transform_indices = @transform_9, window_bounds = array<i64: 8, 1>}]} {
    %c0_i32 = arith.constant 0 : i32
    %0 = arith.cmpi eq, %arg0, %c0_i32 : i32
    %c0_i32_0 = arith.constant 0 : i32
    %1 = arith.cmpi eq, %arg1, %c0_i32_0 : i32
    %2 = arith.andi %0, %1 : i1
    %3 = arith.extui %2 : i1 to i32
    %c0_i32_1 = arith.constant 0 : i32
    %4 = arith.cmpi ne, %3, %c0_i32_1 : i32
    scf.if %4 {
      %c0_15 = arith.constant 0 : index
      %c0_16 = arith.constant 0 : index
      %25 = vector.load %arg2[%c0_15, %c0_16] : memref<8x512xbf16, #tpu.memory_space<vmem>>, vector<8x512xbf16>
      %c0_17 = arith.constant 0 : index
      %c0_18 = arith.constant 0 : index
      %26 = vector.load %arg13[%c0_17, %c0_18] : memref<8x512xbf16, #tpu.memory_space<vmem>>, vector<8x512xbf16>
      tpu.vector_store %arg13[%c0_17, %c0_18], %25 {strides = array<i32>} : memref<8x512xbf16, #tpu.memory_space<vmem>>, vector<8x512xbf16>,
    } else {
    }
    %c1_i32 = arith.constant 1 : i32
    %5 = arith.cmpi eq, %arg0, %c1_i32 : i32
    %c0_i32_2 = arith.constant 0 : i32
    %6 = arith.cmpi eq, %arg1, %c0_i32_2 : i32
    %7 = arith.andi %5, %6 : i1
    %8 = arith.extui %7 : i1 to i32
    %c0_i32_3 = arith.constant 0 : i32
    %9 = arith.cmpi ne, %8, %c0_i32_3 : i32
    scf.if %9 {
      %c0_15 = arith.constant 0 : index
      %c0_16 = arith.constant 0 : index
      %25 = vector.load %arg3[%c0_15, %c0_16] : memref<8x256xbf16, #tpu.memory_space<vmem>>, vector<8x256xbf16>
      %c0_17 = arith.constant 0 : index
      %c0_18 = arith.constant 0 : index
      %26 = vector.load %arg13[%c0_17, %c0_18] : memref<8x512xbf16, #tpu.memory_space<vmem>>, vector<8x256xbf16>
      tpu.vector_store %arg13[%c0_17, %c0_18], %25 {strides = array<i32>} : memref<8x512xbf16, #tpu.memory_space<vmem>>, vector<8x256xbf16>,
      %c0_19 = arith.constant 0 : index
      %c0_20 = arith.constant 0 : index
      %c0_21 = arith.constant 0 : index
      %27 = vector.load %arg12[%c0_19, %c0_20, %c0_21] : memref<2x8x128xf32, #tpu.memory_space<vmem>>, vector<1x8x128xf32>
      %28 = vector.shape_cast %27 : vector<1x8x128xf32> to vector<8x128xf32>
      %29 = arith.truncf %28 : vector<8x128xf32> to vector<8x128xbf16>
      %c0_22 = arith.constant 0 : index
      %c256 = arith.constant 256 : index
      %30 = vector.load %arg13[%c0_22, %c256] : memref<8x512xbf16, #tpu.memory_space<vmem>>, vector<8x128xbf16>
      tpu.vector_store %arg13[%c0_22, %c256], %29 {strides = array<i32>} : memref<8x512xbf16, #tpu.memory_space<vmem>>, vector<8x128xbf16>,
      %c1 = arith.constant 1 : index
      %c0_23 = arith.constant 0 : index
      %c0_24 = arith.constant 0 : index
      %31 = vector.load %arg12[%c1, %c0_23, %c0_24] : memref<2x8x128xf32, #tpu.memory_space<vmem>>, vector<1x8x128xf32>
      %32 = vector.shape_cast %31 : vector<1x8x128xf32> to vector<8x128xf32>
      %33 = arith.truncf %32 : vector<8x128xf32> to vector<8x128xbf16>
      %c0_25 = arith.constant 0 : index
      %c384 = arith.constant 384 : index
      %34 = vector.load %arg13[%c0_25, %c384] : memref<8x512xbf16, #tpu.memory_space<vmem>>, vector<8x128xbf16>
      tpu.vector_store %arg13[%c0_25, %c384], %33 {strides = array<i32>} : memref<8x512xbf16, #tpu.memory_space<vmem>>, vector<8x128xbf16>,
      %c0_26 = arith.constant 0 : index
      %c0_27 = arith.constant 0 : index
      %35 = vector.load %arg10[%c0_26, %c0_27] : memref<1x1xf32, #tpu.memory_space<vmem>>, vector<1x1xf32>
      %36 = vector.shape_cast %35 : vector<1x1xf32> to vector<1x1xf32>
      %37 = vector.broadcast %36 : vector<1x1xf32> to vector<8x1xf32>
      %c0_28 = arith.constant 0 : index
      %c0_29 = arith.constant 0 : index
      %38 = vector.load %arg11[%c0_28, %c0_29] : memref<8x1xf32, #tpu.memory_space<vmem>>, vector<8x1xf32>
      tpu.vector_store %arg11[%c0_28, %c0_29], %37 {strides = array<i32>} : memref<8x1xf32, #tpu.memory_space<vmem>>, vector<8x1xf32>,
    } else {
    }
    %c0 = arith.constant 0 : index
    %c0_4 = arith.constant 0 : index
    %10 = vector.load %arg13[%c0, %c0_4] : memref<8x512xbf16, #tpu.memory_space<vmem>>, vector<8x512xbf16>
    %c0_5 = arith.constant 0 : index
    %c0_6 = arith.constant 0 : index
    %c0_7 = arith.constant 0 : index
    %11 = vector.load %arg7[%c0_5, %c0_6, %c0_7] : memref<1x512x128xbf16, #tpu.memory_space<vmem>>, vector<1x512x128xbf16>
    %12 = vector.shape_cast %11 : vector<1x512x128xbf16> to vector<512x128xbf16>
    %cst = arith.constant dense<0.000000e+00> : vector<8x128xf32>
    %13 = tpu.matmul %10, %12, %cst {dimension_numbers = #tpu.dot_dimension_numbers<[1], [0], [0], [1], [0, 0, 1, 1], [], []>} : vector<8x512xbf16>, vector<512x128xbf16>, vector<8x128xf32> -> vector<8x128xf32>
    %c0_8 = arith.constant 0 : index
    %c0_9 = arith.constant 0 : index
    %c0_10 = arith.constant 0 : index
    %14 = vector.load %arg8[%c0_8, %c0_9, %c0_10] : memref<1x1x128xf32, #tpu.memory_space<vmem>>, vector<1x1x128xf32>
    %15 = vector.shape_cast %14 : vector<1x1x128xf32> to vector<1x128xf32>
    %16 = vector.broadcast %15 : vector<1x128xf32> to vector<8x128xf32>
    %17 = arith.addf %13, %16 : vector<8x128xf32>
    %18 = math.tanh %17 : vector<8x128xf32>
    %c0_i32_11 = arith.constant 0 : i32
    %19 = arith.cmpi eq, %arg0, %c0_i32_11 : i32
    %20 = arith.extui %19 : i1 to i32
    %c0_i32_12 = arith.constant 0 : i32
    %21 = arith.cmpi ne, %20, %c0_i32_12 : i32
    scf.if %21 {
      %c0_15 = arith.constant 0 : index
      %c0_16 = arith.constant 0 : index
      %25 = vector.load %arg5[%c0_15, %c0_16] : memref<8x128xf32, #tpu.memory_space<vmem>>, vector<8x128xf32>
      %26 = arith.mulf %18, %25 : vector<8x128xf32>
      %cst_17 = arith.constant dense<0.000000e+00> : vector<128xf32>
      %27 = vector.multi_reduction <add>, %26, %cst_17 [0] : vector<8x128xf32> to vector<128xf32>
      %28 = vector.shape_cast %27 : vector<128xf32> to vector<1x128xf32>
      %c0_18 = arith.constant 0 : index
      %c0_19 = arith.constant 0 : index
      %29 = vector.load %arg4[%c0_18, %c0_19] : memref<8x128xf32, #tpu.memory_space<vmem>>, vector<8x128xf32>
      %30 = vector.broadcast %28 : vector<1x128xf32> to vector<8x128xf32>
      %31 = arith.mulf %29, %30 : vector<8x128xf32>
      %32 = arith.index_cast %arg1 : i32 to index
      %c0_20 = arith.constant 0 : index
      %c0_21 = arith.constant 0 : index
      %33 = vector.load %arg12[%32, %c0_20, %c0_21] : memref<2x8x128xf32, #tpu.memory_space<vmem>>, vector<1x8x128xf32>
      %34 = vector.shape_cast %33 : vector<1x8x128xf32> to vector<8x128xf32>
      %35 = vector.shape_cast %31 : vector<8x128xf32> to vector<1x8x128xf32>
      tpu.vector_store %arg12[%32, %c0_20, %c0_21], %35 {strides = array<i32>} : memref<2x8x128xf32, #tpu.memory_space<vmem>>, vector<1x8x128xf32>,
    } else {
    }
    %c1_i32_13 = arith.constant 1 : i32
    %22 = arith.cmpi eq, %arg0, %c1_i32_13 : i32
    %23 = arith.extui %22 : i1 to i32
    %c0_i32_14 = arith.constant 0 : i32
    %24 = arith.cmpi ne, %23, %c0_i32_14 : i32
    scf.if %24 {
      %c0_15 = arith.constant 0 : index
      %c0_16 = arith.constant 0 : index
      %25 = vector.load %arg6[%c0_15, %c0_16] : memref<8x128xf32, #tpu.memory_space<vmem>>, vector<8x128xf32>
      %26 = arith.mulf %18, %25 : vector<8x128xf32>
      %cst_17 = arith.constant dense<0.000000e+00> : vector<128xf32>
      %27 = vector.multi_reduction <add>, %26, %cst_17 [0] : vector<8x128xf32> to vector<128xf32>
      %28 = vector.shape_cast %27 : vector<128xf32> to vector<1x128xf32>
      %29 = arith.index_cast %arg1 : i32 to index
      %c0_18 = arith.constant 0 : index
      %c0_19 = arith.constant 0 : index
      %30 = vector.load %arg12[%29, %c0_18, %c0_19] : memref<2x8x128xf32, #tpu.memory_space<vmem>>, vector<1x8x128xf32>
      %31 = vector.shape_cast %30 : vector<1x8x128xf32> to vector<8x128xf32>
      %32 = vector.broadcast %28 : vector<1x128xf32> to vector<8x128xf32>
      %33 = arith.mulf %32, %31 : vector<8x128xf32>
      %c0_20 = arith.constant 0 : index
      %c0_21 = arith.constant 0 : index
      %34 = vector.load %arg4[%c0_20, %c0_21] : memref<8x128xf32, #tpu.memory_space<vmem>>, vector<8x128xf32>
      %35 = arith.mulf %33, %34 : vector<8x128xf32>
      %c0_22 = arith.constant 0 : index
      %c0_23 = arith.constant 0 : index
      %36 = vector.load %arg11[%c0_22, %c0_23] : memref<8x1xf32, #tpu.memory_space<vmem>>, vector<8x1xf32>
      %c0_24 = arith.constant 0 : index
      %c0_25 = arith.constant 0 : index
      %37 = vector.load %arg9[%c0_24, %c0_25] : memref<1x128xf32, #tpu.memory_space<vmem>>, vector<1x128xf32>
      %38 = vector.broadcast %37 : vector<1x128xf32> to vector<8x128xf32>
      %39 = arith.mulf %35, %38 : vector<8x128xf32>
      %cst_26 = arith.constant dense<0.000000e+00> : vector<8xf32>
      %40 = vector.multi_reduction <add>, %39, %cst_26 [1] : vector<8x128xf32> to vector<8xf32>
      %41 = vector.shape_cast %40 : vector<8xf32> to vector<8x1xf32>
      %42 = arith.addf %36, %41 : vector<8x1xf32>
      %c0_27 = arith.constant 0 : index
      %c0_28 = arith.constant 0 : index
      %43 = vector.load %arg11[%c0_27, %c0_28] : memref<8x1xf32, #tpu.memory_space<vmem>>, vector<8x1xf32>
      tpu.vector_store %arg11[%c0_27, %c0_28], %42 {strides = array<i32>} : memref<8x1xf32, #tpu.memory_space<vmem>>, vector<8x1xf32>,
    } else {
    }
    return
  }
  func.func @transform_0(%arg0: i32, %arg1: i32) -> (i32, i32) {
    %c0_i32 = arith.constant 0 : i32
    %c0_i32_0 = arith.constant 0 : i32
    %c0_i32_1 = arith.constant 0 : i32
    return %c0_i32, %c0_i32_0 : i32, i32
  }
  func.func @transform_1(%arg0: i32, %arg1: i32) -> (i32, i32) {
    %c0_i32 = arith.constant 0 : i32
    %c0_i32_0 = arith.constant 0 : i32
    %c0_i32_1 = arith.constant 0 : i32
    return %c0_i32, %c0_i32_0 : i32, i32
  }
  func.func @transform_2(%arg0: i32, %arg1: i32) -> (i32, i32) {
    %c0_i32 = arith.constant 0 : i32
    %c0_i32_0 = arith.constant 0 : i32
    return %c0_i32, %arg1 : i32, i32
  }
  func.func @transform_3(%arg0: i32, %arg1: i32) -> (i32, i32) {
    %c0_i32 = arith.constant 0 : i32
    %c0_i32_0 = arith.constant 0 : i32
    return %c0_i32, %arg1 : i32, i32
  }
  func.func @transform_4(%arg0: i32, %arg1: i32) -> (i32, i32) {
    %c0_i32 = arith.constant 0 : i32
    %c0_i32_0 = arith.constant 0 : i32
    return %c0_i32, %arg1 : i32, i32
  }
  func.func @transform_5(%arg0: i32, %arg1: i32) -> (i32, i32, i32) {
    %c0_i32 = arith.constant 0 : i32
    %c0_i32_0 = arith.constant 0 : i32
    return %arg0, %c0_i32, %arg1 : i32, i32, i32
  }
  func.func @transform_6(%arg0: i32, %arg1: i32) -> (i32, i32, i32) {
    %c0_i32 = arith.constant 0 : i32
    %c0_i32_0 = arith.constant 0 : i32
    return %arg0, %c0_i32, %arg1 : i32, i32, i32
  }
  func.func @transform_7(%arg0: i32, %arg1: i32) -> (i32, i32) {
    %c0_i32 = arith.constant 0 : i32
    %c0_i32_0 = arith.constant 0 : i32
    return %c0_i32, %arg1 : i32, i32
  }
  func.func @transform_8(%arg0: i32, %arg1: i32) -> (i32, i32) {
    %c0_i32 = arith.constant 0 : i32
    %c0_i32_0 = arith.constant 0 : i32
    %c0_i32_1 = arith.constant 0 : i32
    return %c0_i32, %c0_i32_0 : i32, i32
  }
  func.func @transform_9(%arg0: i32, %arg1: i32) -> (i32, i32) {
    %c0_i32 = arith.constant 0 : i32
    %c0_i32_0 = arith.constant 0 : i32
    %c0_i32_1 = arith.constant 0 : i32
    return %c0_i32, %c0_i32_0 : i32, i32
  }
}

</mosaic_0001>

<bundles_post_ra>
// kernel: vit_bd_v4_head.1
= control target key start
LH: loop header
LB: loop body
LE: loop exit
PB: predicated region body
PF: predicated region fallthrough
CT: control target
= control target key end

     0   :  { %s1645_s0 = inlined_call_operand.vmem [shape: bf16[8,512], index: 0, kind: input, shape index: {}]   ;;  %s1646_s1 = inlined_call_operand.vmem [shape: bf16[8,256], index: 1, kind: input, shape index: {}]   ;;  %s1647_s2 = inlined_call_operand.vmem [shape: f32[8,256], index: 2, kind: input, shape index: {}]   ;;  %s1648_s3 = inlined_call_operand.vmem [shape: f32[8,256], index: 3, kind: input, shape index: {}]   ;;  %s1649_s4 = inlined_call_operand.vmem [shape: f32[8,256], index: 4, kind: input, shape index: {}]   ;;  %s1650_s5 = inlined_call_operand.hbm [shape: bf16[2,512,256], index: 5, kind: input, shape index: {}]   ;;  %s1651_s6 = inlined_call_operand.vmem [shape: f32[2,1,256], index: 6, kind: input, shape index: {}]   ;;  %s1652_s7 = inlined_call_operand.vmem [shape: f32[1,256], index: 7, kind: input, shape index: {}]   ;;  %s1653_s8 = inlined_call_operand.<no memory space> [shape: f32[1,1], index: 8, kind: input, shape index: {}]   ;;  %s1654_s9 = inlined_call_operand.vmem [shape: f32[8,1], index: 9, kind: output, shape index: {}]  }
   0x1   :  { %1659 = sst [smem:[#allocation10_spill]] %s1645_s0  ;;  %v14_v0 = vstv %s1653_s8 }
   0x2   :  { %1660 = sst [smem:[#allocation11_spill]] %s1646_s1  ;;  %15 = vst [vmem:[#allocation4] sm:$0x1] %v14_v0 }
   0x3   :  { %1661 = sst [smem:[#allocation12_spill]] %s1647_s2 }
   0x4   :  { %1662 = sst [smem:[#allocation13_spill]] %s1650_s5 }
   0x5   :  { %1663 = sst [smem:[#allocation14_spill]] %s1654_s9 }
   0x6   :  { %16 = vsyncpa [#allocation6], 0 }
   0x7   :  { %18 = vsyncpa [#allocation6 + $0x1], 0  ;;  %s1380_s11 = smov 0   ;;  %s1382_s12 = smov 0  }
   0x8   :  { %s1384_s13 = smov 0   ;;  %s1386_s14 = smov 0  }
   0x9   :  { %s1388_s15 = smov 0   ;;  %s1390_s16 = smov 0  }
   0xa   :  { %s1392_s17 = smov 0   ;;  %s1394_s18 = smov 0  }
   0xb LB: > { %s1006_s8 = sadd.s32 4294967295, %s1321_s18   ;;  %s33_s19 = sadd.s32 1, %s1313_s16  ;;  %s1321_s18 = sphi %s1394_s18, %s24_s18   ;;  %s1317_s17 = sphi %s1392_s17, %s1685_s17   ;;  %s1313_s16 = sphi %s1390_s16, %s1684_s16   ;;  %s1309_s15 = sphi %s1388_s15, %s1683_s15   ;;  %s1305_s14 = sphi %s1386_s14, %s1682_s14   ;;  %s1301_s13 = sphi %s1384_s13, %s1681_s13   ;;  %s1297_s12 = sphi %s1382_s12, %s1680_s12   ;;  %s1293_s11 = sphi %s1380_s11, %s1679_s11  }
   0xc   : > { %p34_p0 = scmp.ge.s32.totalorder %s33_s19, 2  ;;  %s36_s20 = sadd.s32 1, %s1317_s17 }
   0xd   : > { %s165_s21 = sadd.s32 1, %s1301_s13  ;;  %p172_p1 = scmp.ne.s32.totalorder %s1301_s13, %s1297_s12 }
   0xe   : > { %s1687_s19 = smov (%p34_p0, %s33_s19), 0  ;;  %s1689_s20 = smov (!%p34_p0, %s36_s20), %s1317_s17 }
   0xf   : > { %1664 = sst [smem:[#allocation8_spill]] %s1687_s19  ;;  %s161_s22 = ssub.s32 %s1313_s16, %s1687_s19 }
  0x10   : > { %p173_p2 = scmp.eq.s32.totalorder %s1321_s18, 0  ;;  %p38_p3 = scmp.ge.s32.totalorder %s1689_s20, 2 }
  0x11   : > { %p178_p4 = scmp.ne.s32.totalorder %s1297_s12, %s1293_s11  ;;  %p179_p6 = scmp.eq.s32.totalorder %s1006_s8, 0 }
  0x12   : > { %p1431_p5 = por %p173_p2, %p172_p1  ;;  %s1691_s20 = smov (%p38_p3, %s1689_s20), 0 }
  0x13   : > { %1666 = sst [smem:[#allocation9_spill]] %s1691_s20  ;;  %p1437_p7 = por %p179_p6, %p178_p4 }
  0x14   : > { %s160_s25 = ssub.s32 %s1317_s17, %s1691_s20  ;;  %p1119_p8 = scmp.lt.s32.totalorder %s1321_s18, 4 }
  0x15   : > { %s162_s26 = sor.u32 %s161_s22, %s160_s25  ;;  %s328_s27 = sand.u32 1, %s1301_s13  }
  0x16   : > { %p163_p9 = scmp.eq.s32.totalorder %s162_s26, 0  ;;  %s1009_s28 = sshll.u32 %s328_s27, 8 }
  0x17   : > { %s1010_s29 = sshll.u32 %s1317_s17, 7  ;;  %s332_s8 = scalar_lea.vmem [#allocation5], %s1009_s28 }
  0x18   : > { %s1447_s30 = scalar_select %p163_p9, %s1301_s13, %s165_s21  }
  0x19   : > { %s337_s10 = sadd.s32 %s1313_s16, %s1010_s29  ;;  %s340_s19 = sshll.u32 %s332_s8, 4  ;;  %s1455_s19 = int_to_ptr.vmem [resolvable:$true] %s340_s19 }
  0x1a   : > { %s1011_s11 = sshll.u32 %s337_s10, 6  ;;  %s1668_s5 = sld [smem:[#allocation13_spill]] }
  0x1b   : > { %p1461_p10 = pnand %p1119_p8, %p1431_p5  ;;  %s1466_s22 = scalar_lea.sflag [#allocation6], %s328_s27 }
  0x1d   : > { %p1227_p13 = pneg %p1461_p10 }
  0x20   : > { %s1453_s0 = scalar_lea.hbm %s1668_s5, %s1011_s11  ;;  %s1230_s25 = scalar_lea.hbm %s1668_s5, 16384 }
  0x21   : > { %s1225_s1 = scalar_lea.hbm %s1453_s0, 4096  ;;  %p1231_p2 = scmp.lt.u32.totalorder %s1453_s0, %s1668_s5 }
  0x22   : > { %p1226_p12 = scmp.ne.s32.totalorder %s1453_s0, %s1225_s1  ;;  %p1232_p3 = scmp.lt.u32.totalorder %s1230_s25, %s1225_s1 }
  0x23   : > { %p1234_p5 = scmp.lt.u32.totalorder %s1225_s1, %s1453_s0 }
  0x24   : > { %p1228_p0 = pnand %p1227_p13, %p1226_p12  ;;  %p1233_p4 = por %p1232_p3, %p1231_p2 }
  0x26   : > { %p1229_p1 = pneg %p1228_p0  ;;  %p1235_p6 = por %p1234_p5, %p1233_p4 }
  0x28   : > { %p1236_p8 = pnand %p1235_p6, %p1229_p1 }
  0x2a   : > { %1239 = shalt.err (!%p1236_p8)
}
  0x2b   : > { %s1240_s27 = scalar_lea.vmem %s1455_s19, 4096  ;;  %s1323_s29 = smov [#allocation5]  }
  0x2c   : > { %p1241_p9 = scmp.ne.s32.totalorder %s1455_s19, %s1240_s27  ;;  %s1245_s10 = sshll.u32 %s1323_s29, 4  ;;  %s1246_s10 = int_to_ptr.vmem [resolvable:$false] %s1245_s10 }
  0x2d   : > { %s1247_s11 = scalar_lea.vmem %s1246_s10, 8192  ;;  %p1248_p11 = scmp.lt.s32.totalorder %s1455_s19, %s1246_s10 }
  0x2e   : > { %p1243_p12 = pnand %p1241_p9, %p1227_p13  ;;  %p1249_p2 = scmp.lt.s32.totalorder %s1247_s11, %s1240_s27 }
  0x30   : > { %p1244_p0 = pneg %p1243_p12  ;;  %p1250_p3 = por %p1249_p2, %p1248_p11 }
  0x32   : > { %p1251_p4 = pnand %p1250_p3, %p1244_p0 }
  0x34   : > { %1254 = shalt.err (!%p1251_p4)
}
  0x35   : > { %s1324_s8 = smov 128   ;;  %s1325_s1 = smov 64  }
  0x36   : > { %s1326_s9 = smov 4   ;;  %p364_p13 = scmp.lt.s32.totalorder %s1321_s18, 5 }
  0x37   : > { %1118 = dma.hbm_to_vmem [thread:$0]  (!%p1461_p10), %s1453_s0, 4096, %s1455_s19, %s1466_s22, %s1324_s8, %s1325_s1, %s1326_s9  }
  0x38   : > { %p1670_p1 = scmp.ge.s32.totalorder %s1321_s18, 1 }
  0x3a   : > { %p365_p5 = pnand %p1670_p1, %p364_p13 }
  0x3b   : > { %s370_s23 = sand.u32 (!%p365_p5), 1, %s1297_s12  }
  0x3c   : > { %368 = sbr.rel (%p365_p5) target bundleno = 545 (0x221), region = 56  ;;  %s1013_s25 = sshll.u32 (!%p365_p5), %s370_s23, 8 }
  0x3d   : > { %s371_s26 = scalar_lea.sflag (!%p365_p5), [#allocation6], %s370_s23  ;;  %s1498_s28 = scalar_lea.vmem (!%p365_p5), [#allocation5], %s1013_s25 }
  0x43   : > { %1288 = dma.done.wait (%p1437_p7), %s371_s26, 4096  }
  0x44   : > { %1290 = vsyncadd (%p1437_p7), %s371_s26, 4294963200  ;;  %p426_p10 = scmp.lt.s32.totalorder %s1305_s14, 1  ;;  %p438_p11 = scmp.lt.s32.totalorder %s1309_s15, 1 }
  0x45   : > { %p449_p6 = scmp.eq.s32.totalorder %s1309_s15, 0  ;;  %p450_p8 = scmp.eq.s32.totalorder %s1305_s14, 0 }
  0x46   : > { %s1509_s0 = scalar_select %p426_p10, %s1305_s14, 1 }
  0x47   : > { %s439_s19 = scalar_select %p438_p11, %s1309_s15, 1 }
  0x48   : > { %s1513_s21 = sshll.u32 %s1509_s0, 3  ;;  %s1671_s2 = sld [smem:[#allocation12_spill]] }
  0x49   : > { %s433_s9 = scalar_lea.vmem %s1648_s3, %s1513_s21  ;;  %s437_s26 = scalar_lea.vmem %s1649_s4, %s1513_s21 }
  0x4a   : > { %s1017_s5 = sshll.u32 %s439_s19, 1  ;;  %p451_p7 = pnand %p450_p8, %p449_p6 }
  0x4b   : > { %s1534_s20 = sadd.s32 %s1017_s5, %s1509_s0 }
  0x4c   : > { %s444_s29 = scalar_lea.vmem %s1651_s6, %s1534_s20  ;;  %454 = sbr.rel (%p451_p7) target bundleno = 86 (0x56), region = 64 }
  0x4e   : > { %s1523_s11 = scalar_lea.vmem %s1671_s2, %s1513_s21  ;;  %s1672_s2 = sld [smem:[#allocation10_spill]] (!%p451_p7) }
  0x54   : > { %v455_v1 = vld [vmem:[%s1672_s2] sm:$0xff]  ;;  %v456_v2 = vld [vmem:[%s1672_s2 + $0x8] sm:$0xff] }
  0x55   : > { %457 = vst [vmem:[#allocation3] sm:$0xff] %v455_v1  ;;  %458 = vst [vmem:[#allocation3 + $0x8] sm:$0xff] %v456_v2 }
  0x56 PF: > { %p459_p9 = scmp.eq.s32.totalorder %s1309_s15, 1 }
  0x58   : > { %p460_p12 = pnand %p459_p9, %p450_p8 }
  0x59   : > { %s1673_s23 = sld [smem:[#allocation11_spill]] (!%p460_p12)  ;;  %v466_v4 = vld [vmem:[#allocation2] sm:$0xff] (!%p460_p12)  ;;  %v470_v5 = vld [vmem:[#allocation2 + $0x8] sm:$0xff] (!%p460_p12)  ;;  %vm480_vm0 = vcmask (!%p460_p12), 7168   ;;  %s1674_s24 = sld [smem:[#allocation14_spill]] (!%p460_p12) }
  0x5a   : > { %463 = sbr.rel (%p460_p12) target bundleno = 97 (0x61), region = 68  ;;  %v1066_v6 = vpack.c.bf16 (!%p460_p12), %v470_v5, %v466_v4  ;;  %v1018_v7 = vld [vmem:[#allocation4] ss:$0 sm:$0xff] (!%p460_p12) }
  0x5c   : > { %1068 = vst [vmem:[#allocation3 + $0x8] sm:$0xff] (!%p460_p12), %v1066_v6  }
  0x5f   : > { %v464_v3 = vld [vmem:[%s1673_s23] sm:$0xff] (!%p460_p12)  ;;  %481 = vst.msk [vmem:[%s1674_s24] sm:$0xff] (!%p460_p12), %vm480_vm0, %v1018_v7 }
  0x60   : > { %465 = vst [vmem:[#allocation3] sm:$0xff] (!%p460_p12), %v464_v3 }
  0x61 PF: > { %v1187_v8 = vld [vmem:[%s1498_s28 + $0x40] sm:$0xff]   ;;  %v1191_v12 = vld [vmem:[%s1498_s28 + $0x48] sm:$0xff]   ;;  %v1195_v16 = vld [vmem:[%s1498_s28 + $0x50] sm:$0xff]   ;;  %p1056_p0 = scmp.ne.s32.totalorder %s1309_s15, 0 }
  0x62   : > { %v1188_v9 = vld [vmem:[%s1498_s28 + $0xc0] sm:$0xff]   ;;  %1069 = vmatprep.subr.bf16.mxu0 %v1187_v8  ;;  %v1192_v13 = vld [vmem:[%s1498_s28 + $0xc8] sm:$0xff]   ;;  %v1196_v17 = vld [vmem:[%s1498_s28 + $0xd0] sm:$0xff]   ;;  %s1057_s20 = sshll.u32 (!%p1056_p0), %s1305_s14, 3 }
  0x63   : > { %v1189_v10 = vld [vmem:[%s1498_s28] sm:$0xff]   ;;  %1091 = vmatprep.subr.bf16.mxu1 %v1188_v9  ;;  %v1193_v14 = vld [vmem:[%s1498_s28 + $0x8] sm:$0xff]   ;;  %v1197_v18 = vld [vmem:[%s1498_s28 + $0x10] sm:$0xff]  }
  0x64   : > { %v1190_v11 = vld [vmem:[%s1498_s28 + $0x80] sm:$0xff]   ;;  %1070 = vmatpush3.bf16.msra.mxu0 %v1189_v10  ;;  %v1194_v15 = vld [vmem:[%s1498_s28 + $0x88] sm:$0xff]   ;;  %v1198_v19 = vld [vmem:[%s1498_s28 + $0x90] sm:$0xff]  }
  0x65   : > { %1092 = vmatpush3.bf16.msra.mxu1 %v1190_v11  ;;  %1071 = vmatprep.subr.bf16.mxu0 %v1191_v12  ;;  %v1199_v20 = vld [vmem:[%s1498_s28 + $0x58] sm:$0xff]   ;;  %v1203_v24 = vld [vmem:[%s1498_s28 + $0x60] sm:$0xff]   ;;  %v1207_v28 = vld [vmem:[%s1498_s28 + $0x68] sm:$0xff]  }
  0x66   : > { %1093 = vmatprep.subr.bf16.mxu1 %v1192_v13  ;;  %v1200_v21 = vld [vmem:[%s1498_s28 + $0xd8] sm:$0xff]   ;;  %v1204_v25 = vld [vmem:[%s1498_s28 + $0xe0] sm:$0xff]   ;;  %v1208_v29 = vld [vmem:[%s1498_s28 + $0xe8] sm:$0xff]  }
  0x67   : > { %v1201_v22 = vld [vmem:[%s1498_s28 + $0x18] sm:$0xff]   ;;  %v1205_v26 = vld [vmem:[%s1498_s28 + $0x20] sm:$0xff]   ;;  %v1209_v30 = vld [vmem:[%s1498_s28 + $0x28] sm:$0xff]  }
  0x68   : > { %1072 = vmatpush3.bf16.msra.mxu0 %v1193_v14  ;;  %v1202_v23 = vld [vmem:[%s1498_s28 + $0x98] sm:$0xff]   ;;  %v1206_v27 = vld [vmem:[%s1498_s28 + $0xa0] sm:$0xff]   ;;  %v1210_v31 = vld [vmem:[%s1498_s28 + $0xa8] sm:$0xff]  }
  0x69   : > { %1094 = vmatpush3.bf16.msra.mxu1 %v1194_v15  ;;  %1073 = vmatprep.subr.bf16.mxu0 %v1195_v16  ;;  %v1211_v32 = vld [vmem:[%s1498_s28 + $0x70] sm:$0xff]   ;;  %v1215_v36 = vld [vmem:[%s1498_s28 + $0x78] sm:$0xff]  }
  0x6a   : > { %1095 = vmatprep.subr.bf16.mxu1 %v1196_v17  ;;  %v1212_v33 = vld [vmem:[%s1498_s28 + $0xf0] sm:$0xff]   ;;  %v1216_v37 = vld [vmem:[%s1498_s28 + $0xf8] sm:$0xff]  }
  0x6b   : > { %v1213_v34 = vld [vmem:[%s1498_s28 + $0x30] sm:$0xff]   ;;  %v1217_v38 = vld [vmem:[%s1498_s28 + $0x38] sm:$0xff]  }
  0x6c   : > { %1074 = vmatpush3.bf16.msra.mxu0 %v1197_v18  ;;  %v1214_v35 = vld [vmem:[%s1498_s28 + $0xb0] sm:$0xff]   ;;  %v1218_v39 = vld [vmem:[%s1498_s28 + $0xb8] sm:$0xff]  }
  0x6d   : > { %1096 = vmatpush3.bf16.msra.mxu1 %v1198_v19  ;;  %1075 = vmatprep.subr.bf16.mxu0 %v1199_v20  ;;  %v482_v40 = vld [vmem:[#allocation3] sm:$0xff]  ;;  %v483_v41 = vld [vmem:[#allocation3 + $0x8] sm:$0xff]  ;;  %v1019_v48 = vld [vmem:[%s444_s29] ss:$0 sm:$0xff]  ;;  %s856_s29 = scalar_lea.vmem (!%p1056_p0), [#allocation2], %s1057_s20 }
  0x6e   : > { %1097 = vmatprep.subr.bf16.mxu1 %v1200_v21  ;;  %v1020_v42 = vcombine.low %v482_v40, %v482_v40  ;;  %v1021_v43 = vcombine.high %v482_v40, %v482_v40  ;;  %v1022_v44 = vcombine.low %v483_v41, %v483_v41  ;;  %v1023_v45 = vcombine.high %v483_v41, %v483_v41  ;;  %v845_v60 = vld [vmem:[%s433_s9] sm:$0xff] (!%p1056_p0) }
  0x6f   : > { %v853_v3 = vld [vmem:[%s1523_s11] sm:$0xff] (!%p1056_p0) }
  0x70   : > { %1076 = vmatpush3.bf16.msra.mxu0 %v1201_v22  ;;  %793 = vmatprep.mubr.bf16.mxu0 %v1021_v43 }
  0x71   : > { %1098 = vmatpush3.bf16.msra.mxu1 %v1202_v23  ;;  %1077 = vmatprep.subr.bf16.mxu0 %v1203_v24 }
  0x72   : > { %1099 = vmatprep.subr.bf16.mxu1 %v1204_v25  ;;  %833 = vmatprep.mubr.bf16.mxu1 %v1023_v45 }
  0x74   : > { %1078 = vmatpush3.bf16.msra.mxu0 %v1205_v26 }
  0x75   : > { %1100 = vmatpush3.bf16.msra.mxu1 %v1206_v27  ;;  %1079 = vmatprep.subr.bf16.mxu0 %v1207_v28 }
  0x76   : > { %1101 = vmatprep.subr.bf16.mxu1 %v1208_v29 }
  0x78   : > { %1080 = vmatpush3.bf16.msra.mxu0 %v1209_v30 }
  0x79   : > { %1102 = vmatpush3.bf16.msra.mxu1 %v1210_v31  ;;  %1081 = vmatprep.subr.bf16.mxu0 %v1211_v32 }
  0x7a   : > { %1103 = vmatprep.subr.bf16.mxu1 %v1212_v33 }
  0x7c   : > { %1082 = vmatpush3.bf16.msra.mxu0 %v1213_v34 }
  0x7d   : > { %1104 = vmatpush3.bf16.msra.mxu1 %v1214_v35  ;;  %1083 = vmatprep.subr.bf16.mxu0 %v1215_v36 }
  0x7e   : > { %1105 = vmatprep.subr.bf16.mxu1 %v1216_v37 }
  0x80   : > { %1084 = vmatpush3.bf16.msra.mxu0 %v1217_v38 }
  0x81   : > { %1106 = vmatpush3.bf16.msra.mxu1 %v1218_v39 }
  0x83   : > { %794 = vmatmul.mubr.bf16.vlgmr.msra.gmra.mrb[0].mxu0 %v1020_v42 }
  0x84   : > { %834 = vmatmul.mubr.bf16.vlgmr.msra.gmra.mrb[0].mxu1 %v1022_v44 }
 0x156   : > { %v1085_v46 = vpop.f32.mrb[0].mxu0 }
 0x157   : > { %v1107_v47 = vpop.f32.mrb[0].mxu1  ;;  %v1086_v49 = vpop.f32.mrb[1].mxu0 }
 0x158   : > { %v1108_v50 = vpop.f32.mrb[1].mxu1  ;;  %v1087_v51 = vadd.f32 %v1086_v49, %v1085_v46  ;;  %v1088_v53 = vpop.f32.mrb[2].mxu0 }
 0x159   : > { %v1109_v52 = vadd.f32 %v1108_v50, %v1107_v47  ;;  %v1110_v54 = vpop.f32.mrb[2].mxu1  ;;  %v1089_v55 = vpop.f32.mrb[3].mxu0 }
 0x15a   : > { %v1111_v56 = vpop.f32.mrb[3].mxu1  ;;  %v796_v57 = vadd.f32 %v1087_v51, %v1019_v48 }
 0x15c   : > { %v836_v58 = vadd.f32 %v1109_v52, %v796_v57 }
 0x15e   : > { %1223 = vtanh.f32 %v836_v58 }
 0x162   : > { %844 = sbr.rel (%p1056_p0) target bundleno = 378 (0x17a), region = 72 }
 0x168   : > { %v1224_v59 = vpop.eup %1223 }
 0x169   : > { %v846_v61 = vmul.f32 %v1224_v59, %v845_v60 }
 0x16b   : > { %v847_v62 = vrot.slane %v846_v61, 4 }
 0x16d   : > { %v848_v63 = vadd.f32 %v847_v62, %v846_v61 }
 0x16f   : > { %v849_v0 = vrot.slane %v848_v63, 2 }
 0x171   : > { %v850_v1 = vadd.f32 %v849_v0, %v848_v63 }
 0x173   : > { %v851_v2 = vrot.slane %v850_v1, 1 }
 0x175   : > { %v852_v4 = vadd.f32 %v851_v2, %v850_v1 }
 0x177   : > { %v854_v5 = vmul.f32 %v853_v3, %v852_v4 }
 0x179   : > { %857 = vst [vmem:[%s856_s29] sm:$0xff] %v854_v5 }
 0x17a PF: > { %p1058_p2 = scmp.ne.s32.totalorder %s1309_s15, 1 }
 0x17b   : > { %v861_v6 = vld [vmem:[%s437_s26] sm:$0xff] (!%p1058_p2)  ;;  %s1059_s9 = sshll.u32 (!%p1058_p2), %s1305_s14, 3  ;;  %s1675_s21 = scalar_lea.vmem (!%p1058_p2), %s1652_s7, %s1509_s0  ;;  %vm887_vm1 = vcmask (!%p1058_p2), 7168  }
 0x17c   : > { %860 = sbr.rel (%p1058_p2) target bundleno = 545 (0x221), region = 76  ;;  %v862_v7 = vmul.f32 (!%p1058_p2), %v1224_v59, %v861_v6  ;;  %s870_s19 = scalar_lea.vmem (!%p1058_p2), [#allocation2], %s1059_s9  ;;  %v873_v15 = vld [vmem:[%s1523_s11] sm:$0xff] (!%p1058_p2) }
 0x17d   : > { %v1060_v17 = vld [vmem:[%s1675_s21] ss:$0 sm:$0xff] (!%p1058_p2)  ;;  %s1676_s25 = sld [smem:[#allocation14_spill]] (!%p1058_p2) }
 0x17e   : > { %v863_v8 = vrot.slane (!%p1058_p2), %v862_v7, 4 }
 0x180   : > { %v864_v9 = vadd.f32 (!%p1058_p2), %v863_v8, %v862_v7  ;;  %v871_v13 = vld [vmem:[%s870_s19] sm:$0xff] (!%p1058_p2) }
 0x182   : > { %v865_v10 = vrot.slane (!%p1058_p2), %v864_v9, 2 }
 0x183   : > { %v875_v20 = vld [vmem:[%s1676_s25] sm:$0xff] }
 0x184   : > { %v866_v11 = vadd.f32 %v865_v10, %v864_v9 }
 0x186   : > { %v867_v12 = vrot.slane %v866_v11, 1 }
 0x188   : > { %v868_v14 = vadd.f32 %v867_v12, %v866_v11 }
 0x18a   : > { %v872_v16 = vmul.f32 %v871_v13, %v868_v14 }
 0x18c   : > { %v874_v18 = vmul.f32 %v873_v15, %v872_v16 }
 0x18e   : > { %v883_v19 = vmul.f32 %v1060_v17, %v874_v18 }
 0x190   : > { %884 = vadd.xlane.f32.xlu0 %v883_v19 }
 0x21d   : > { %v885_v21 = vpop.xlane.xlu0 %884 }
 0x21e   : > { %v886_v22 = vadd.f32 %v885_v21, %v875_v20 }
 0x220   : > { %888 = vst.msk [vmem:[%s1676_s25] sm:$0xff] %vm887_vm1, %v886_v22 }
 0x221 PF: > { %s24_s18 = sadd.s32 1, %s1321_s18   ;;  %s1677_s0 = sld [smem:[#allocation8_spill]] }
 0x222   : > { %p21_p3 = scmp.ge.s32.totalorder %s24_s18, 6   ;;  %s1678_s22 = sld [smem:[#allocation9_spill]] }
 0x223   : > { %s1679_s11 = smov %s1297_s12  ;;  %s1680_s12 = smov %s1301_s13 }
 0x224   : > { %s1681_s13 = smov %s1447_s30  ;;  %s1682_s14 = smov %s1313_s16 }
 0x225   : > { %s1683_s15 = smov %s1317_s17  ;;  %23 = sbr.rel (!%p21_p3) target bundleno = 11 (0xb), region = 126 }
 0x227   : > { %s1684_s16 = smov %s1677_s0 }
 0x228   : > { %s1685_s17 = smov %s1678_s22 }
 0x22c   :  { %900 = vsyncpa [#allocation6], 1 }
 0x22d   :  { %902 = vsyncpa [#allocation6 + $0x1], 1 }

</bundles_post_ra>
